<compile_context>
chip_gen: v6e
topology: v6e:2x2x1
jax: 0.10.0
libtpu: 0.0.40
codegen_flags: <defaults>
</compile_context>

<pallas_src>
import functools

import jax
import jax.numpy as jnp
from jax.experimental import pallas as pl
from jax.experimental.pallas import tpu as pltpu


def _round_up(x, m):
    return (x + m - 1) // m * m


def prepare_rnn_params(w_in, b_in, w_h, compute_dtype=jnp.bfloat16,
                       out_dtype=None):
    """One-time parameter prep (hoisted out of the per-step path).

    w_in: (H, I) PyTorch nn.Linear layout; b_in: (H,); w_h: (H, H).
    Returns transposed, zero-padded, lane-dense weights + bias and metadata.
    """
    H, I = w_in.shape
    H_pad = _round_up(H, 128)          # lane-dense hidden/output dim

    w_in_t = jnp.zeros((I, H_pad), compute_dtype).at[:, :H].set(
        jnp.asarray(w_in).T.astype(compute_dtype))
    w_h_t = jnp.zeros((H_pad, H_pad), compute_dtype).at[:H, :H].set(
        jnp.asarray(w_h).T.astype(compute_dtype))
    # Padded bias columns stay zero so padded hidden lanes remain exactly 0.
    b_pad = jnp.zeros((1, H_pad), jnp.float32).at[0, :H].set(
        jnp.asarray(b_in, jnp.float32))

    return dict(w_in_t=w_in_t, w_h_t=w_h_t, b=b_pad, I=I, H=H, H_pad=H_pad,
                compute_dtype=compute_dtype,
                out_dtype=(compute_dtype if out_dtype is None else out_dtype))


def _rnn_chunk_kernel(x_ref, w_in_ref, w_h_ref, b_ref, h0_ref, out_ref, h_scr,
                      *, tc):
    """Run `tc` RNN steps against VMEM-resident chunks.

    x_ref:    (Tc, Bblk, I)      inputs for this time chunk (compute dtype)
    w_in_ref: (I, H_pad)         W_in^T (VMEM-resident, constant index_map)
    w_h_ref:  (H_pad, H_pad)     W_h^T  (VMEM-resident, constant index_map)
    b_ref:    (1, H_pad)         f32 bias
    h0_ref:   (Bblk, H_pad)      f32 initial state
    out_ref:  (Tc, Bblk, H_pad)  outputs for this time chunk
    h_scr:    (Bblk, H_pad)      f32 carried hidden state
    """
    @pl.when(pl.program_id(1) == 0)
    def _():
        h_scr[...] = h0_ref[...]

    w_in = w_in_ref[...]
    w_h = w_h_ref[...]
    b = b_ref[...]

    # tc is small and static -> fully unrolled straight-line steps with static
    # x_ref[i] / out_ref[i] indices (no per-step grid overhead).
    for i in range(tc):
        x = x_ref[i]                                      # (Bblk, I)
        h = h_scr[...]                                    # (Bblk, H_pad) f32
        acc = jnp.dot(x, w_in, preferred_element_type=jnp.float32)
        acc = acc + jnp.dot(h.astype(w_h.dtype), w_h,
                            preferred_element_type=jnp.float32)
        h_new = jnp.tanh(acc + b)                         # f32 epilogue
        h_scr[...] = h_new                                # carry state in f32
        out_ref[i] = h_new.astype(out_ref.dtype)


def rnn_sequence_forward(xs, h0, params, t_chunk=8):
    """Run T RNNCell steps inside a single fused pallas_call.

    xs: (T, B, I); h0: (B, H).
    Returns (outputs (T, B, H), final_state (B, H)) in the output dtype.
    """
    T, B, I = xs.shape
    assert I == params["I"]
    H, H_pad = params["H"], params["H_pad"]
    cdt = params["compute_dtype"]
    odt = params["out_dtype"]

    # Batch blocking: sublane-dense (16 rows for bf16 packing, 8 for f32),
    # capped at 128 for vreg pressure, and split so the "parallel" batch axis
    # can span both v7x TensorCores when the batch is big enough.
    sub = 16 if cdt == jnp.bfloat16 else 8
    b_blk = min(128, _round_up(B, sub))
    half = (_round_up(B, sub) // 2) // sub * sub
    if half >= sub:
        b_blk = min(b_blk, half)
    B_pad = _round_up(B, b_blk)
    nb = B_pad // b_blk

    # Time chunking: Tc steps per grid iteration (pad T with zero steps; the
    # padded outputs are sliced off below, recurrence semantics are unchanged).
    tc = max(1, min(t_chunk, T))
    T_pad = _round_up(T, tc)
    nt = T_pad // tc

    xs_p = jnp.zeros((T_pad, B_pad, I), cdt).at[:T, :B, :].set(xs.astype(cdt))
    h0_p = jnp.zeros((B_pad, H_pad), jnp.float32).at[:B, :H].set(
        h0.astype(jnp.float32))

    out = pl.pallas_call(
        functools.partial(_rnn_chunk_kernel, tc=tc),
        out_shape=jax.ShapeDtypeStruct((T_pad, B_pad, H_pad), odt),
        grid_spec=pltpu.PrefetchScalarGridSpec(
            num_scalar_prefetch=0,
            grid=(nb, nt),                    # batch parallel, time sequential
            in_specs=[
                # last dim = full I extent (exempt from the 128 rule) -> no
                # padded-x HBM copy needed.
                pl.BlockSpec((tc, b_blk, I), lambda b, t: (t, b, 0)),
                pl.BlockSpec((I, H_pad), lambda b, t: (0, 0)),       # resident
                pl.BlockSpec((H_pad, H_pad), lambda b, t: (0, 0)),   # resident
                pl.BlockSpec((1, H_pad), lambda b, t: (0, 0)),       # resident
                pl.BlockSpec((b_blk, H_pad), lambda b, t: (b, 0)),
            ],
            out_specs=pl.BlockSpec((tc, b_blk, H_pad), lambda b, t: (t, b, 0)),
            scratch_shapes=[pltpu.VMEM((b_blk, H_pad), jnp.float32)],
        ),
        compiler_params=pltpu.CompilerParams(
            dimension_semantics=("parallel", "arbitrary"),
            vmem_limit_bytes=48 * 1024 * 1024),
    )(xs_p, params["w_in_t"], params["w_h_t"], params["b"], h0_p)

    outs = out[:T, :B, :H]
    return outs, outs[-1]


def rnn_cell_forward(x, state, params):
    """Single RNNCell step, matching the PyTorch module's forward signature.

    x: (B, I); state: (B, H).  Returns (output, new_state) — the same tensor.
    """
    outs, new_state = rnn_sequence_forward(x[None], state, params, t_chunk=1)
    return outs[0], new_state


if __name__ == "__main__":
    batch = 8
    input_size = 32
    hidden_size = 32
    seq_len = 8

    key = jax.random.PRNGKey(0)
    kx, kwi, kbi, kwh = jax.random.split(key, 4)

    # Deterministic parameter init (PyTorch-style uniform bounds, synthetic).
    bound_in = 1.0 / jnp.sqrt(jnp.float32(input_size))
    bound_h = 1.0 / jnp.sqrt(jnp.float32(hidden_size))
    w_in = jax.random.uniform(kwi, (hidden_size, input_size), jnp.float32,
                              -bound_in, bound_in)
    b_in = jax.random.uniform(kbi, (hidden_size,), jnp.float32,
                              -bound_in, bound_in)
    w_h = jax.random.uniform(kwh, (hidden_size, hidden_size), jnp.float32,
                             -bound_h, bound_h)

    xs = jax.random.normal(kx, (seq_len, batch, input_size), jnp.float32)
    h0 = jnp.zeros((batch, hidden_size), jnp.float32)   # RNNCell.init(): zeros

    # Plain-JAX reference (exact PyTorch semantics).
    refs = []
    h_ref = h0
    for t in range(seq_len):
        h_ref = jnp.tanh(xs[t] @ w_in.T + b_in + h_ref @ w_h.T)
        refs.append(h_ref)
    ref_seq = jnp.stack(refs)

    # 1) f32 compute path: exact-semantics check of the fused-sequence kernel.
    params_f32 = prepare_rnn_params(w_in, b_in, w_h, compute_dtype=jnp.float32)
    outs_f32, state_f32 = rnn_sequence_forward(xs, h0, params_f32)
    jax.block_until_ready((outs_f32, state_f32))
    assert jnp.allclose(outs_f32, ref_seq, atol=1e-5, rtol=1e-5)
    assert jnp.allclose(state_f32, ref_seq[-1], atol=1e-5, rtol=1e-5)

    # Single-step API matches the module forward (output == new_state).
    out1, new_state1 = rnn_cell_forward(xs[0], h0, params_f32)
    jax.block_until_ready((out1, new_state1))
    assert jnp.allclose(out1, ref_seq[0], atol=1e-5, rtol=1e-5)
    assert jnp.allclose(out1, new_state1)

    # 2) bf16 compute path (recommended on v6e/v7x): bf16 operands + bf16
    #    writeback, f32 accumulate / epilogue / carried state.
    #    (bf16 rounding of the state fed back into the recurrent matmul
    #    compounds over T; tolerance below validated at this T.)
    params_bf16 = prepare_rnn_params(w_in, b_in, w_h, compute_dtype=jnp.bfloat16)
    outs_bf16, state_bf16 = rnn_sequence_forward(xs, h0, params_bf16)
    jax.block_until_ready((outs_bf16, state_bf16))
    assert jnp.allclose(outs_bf16.astype(jnp.float32), ref_seq, atol=3e-2, rtol=0.0)
    assert jnp.allclose(state_bf16.astype(jnp.float32), ref_seq[-1], atol=3e-2, rtol=0.0)

    print("KERNEL_OK")
</pallas_src>

<mosaic_0001>
module attributes {stable_mosaic.version = 11 : i64} {
  func.func @_rnn_chunk_kernel(%arg0: i32, %arg1: i32, %arg2: memref<8x8x32xf32, #tpu.memory_space<vmem>>, %arg3: memref<32x128xf32, #tpu.memory_space<vmem>>, %arg4: memref<128x128xf32, #tpu.memory_space<vmem>>, %arg5: memref<1x128xf32, #tpu.memory_space<vmem>>, %arg6: memref<8x128xf32, #tpu.memory_space<vmem>>, %arg7: memref<8x8x128xf32, #tpu.memory_space<vmem>>, %arg8: memref<8x128xf32, #tpu.memory_space<vmem>>) attributes {dimension_semantics = [#tpu.dimension_semantics<parallel>, #tpu.dimension_semantics<arbitrary>], iteration_bounds = array<i64: 1, 1>, scalar_prefetch = 0 : i64, scratch_operands = 1 : i64, tpu.core_type = #tpu.core_type<tc>, window_params = [{transform_indices = @transform_0, window_bounds = array<i64: 8, 8, 32>}, {pipeline_mode = #tpu.pipeline_mode<synchronous>, transform_indices = @transform_1, window_bounds = array<i64: 32, 128>}, {pipeline_mode = #tpu.pipeline_mode<synchronous>, transform_indices = @transform_2, window_bounds = array<i64: 128, 128>}, {pipeline_mode = #tpu.pipeline_mode<synchronous>, transform_indices = @transform_3, window_bounds = array<i64: 1, 128>}, {transform_indices = @transform_4, window_bounds = array<i64: 8, 128>}, {transform_indices = @transform_5, window_bounds = array<i64: 8, 8, 128>}]} {
    %c0_i32 = arith.constant 0 : i32
    %0 = arith.cmpi eq, %arg1, %c0_i32 : i32
    %1 = arith.extui %0 : i1 to i32
    %c0_i32_0 = arith.constant 0 : i32
    %2 = arith.cmpi ne, %1, %c0_i32_0 : i32
    scf.if %2 {
      %c0_94 = arith.constant 0 : index
      %c0_95 = arith.constant 0 : index
      %110 = vector.load %arg6[%c0_94, %c0_95] : memref<8x128xf32, #tpu.memory_space<vmem>>, vector<8x128xf32>
      %c0_96 = arith.constant 0 : index
      %c0_97 = arith.constant 0 : index
      %111 = vector.load %arg8[%c0_96, %c0_97] : memref<8x128xf32, #tpu.memory_space<vmem>>, vector<8x128xf32>
      tpu.vector_store %arg8[%c0_96, %c0_97], %110 {strides = array<i32>} : memref<8x128xf32, #tpu.memory_space<vmem>>, vector<8x128xf32>,
    } else {
    }
    %c0 = arith.constant 0 : index
    %c0_1 = arith.constant 0 : index
    %3 = vector.load %arg3[%c0, %c0_1] : memref<32x128xf32, #tpu.memory_space<vmem>>, vector<32x128xf32>
    %c0_2 = arith.constant 0 : index
    %c0_3 = arith.constant 0 : index
    %4 = vector.load %arg4[%c0_2, %c0_3] : memref<128x128xf32, #tpu.memory_space<vmem>>, vector<128x128xf32>
    %c0_4 = arith.constant 0 : index
    %c0_5 = arith.constant 0 : index
    %5 = vector.load %arg5[%c0_4, %c0_5] : memref<1x128xf32, #tpu.memory_space<vmem>>, vector<1x128xf32>
    %c0_6 = arith.constant 0 : index
    %c0_7 = arith.constant 0 : index
    %c0_8 = arith.constant 0 : index
    %6 = vector.load %arg2[%c0_6, %c0_7, %c0_8] : memref<8x8x32xf32, #tpu.memory_space<vmem>>, vector<1x8x32xf32>
    %7 = vector.shape_cast %6 : vector<1x8x32xf32> to vector<8x32xf32>
    %c0_9 = arith.constant 0 : index
    %c0_10 = arith.constant 0 : index
    %8 = vector.load %arg8[%c0_9, %c0_10] : memref<8x128xf32, #tpu.memory_space<vmem>>, vector<8x128xf32>
    %cst = arith.constant dense<0.000000e+00> : vector<8x128xf32>
    %9 = tpu.matmul %7, %3, %cst {dimension_numbers = #tpu.dot_dimension_numbers<[1], [0], [0], [1], [0, 0, 1, 1], [], []>} : vector<8x32xf32>, vector<32x128xf32>, vector<8x128xf32> -> vector<8x128xf32>
    %cst_11 = arith.constant dense<0.000000e+00> : vector<8x128xf32>
    %10 = tpu.matmul %8, %4, %cst_11 {dimension_numbers = #tpu.dot_dimension_numbers<[1], [0], [0], [1], [0, 0, 1, 1], [], []>} : vector<8x128xf32>, vector<128x128xf32>, vector<8x128xf32> -> vector<8x128xf32>
    %11 = arith.addf %9, %10 : vector<8x128xf32>
    %12 = vector.broadcast %5 : vector<1x128xf32> to vector<8x128xf32>
    %13 = arith.addf %11, %12 : vector<8x128xf32>
    %14 = math.tanh %13 : vector<8x128xf32>
    %c0_12 = arith.constant 0 : index
    %c0_13 = arith.constant 0 : index
    %15 = vector.load %arg8[%c0_12, %c0_13] : memref<8x128xf32, #tpu.memory_space<vmem>>, vector<8x128xf32>
    tpu.vector_store %arg8[%c0_12, %c0_13], %14 {strides = array<i32>} : memref<8x128xf32, #tpu.memory_space<vmem>>, vector<8x128xf32>,
    %c0_14 = arith.constant 0 : index
    %c0_15 = arith.constant 0 : index
    %c0_16 = arith.constant 0 : index
    %16 = vector.load %arg7[%c0_14, %c0_15, %c0_16] : memref<8x8x128xf32, #tpu.memory_space<vmem>>, vector<1x8x128xf32>
    %17 = vector.shape_cast %16 : vector<1x8x128xf32> to vector<8x128xf32>
    %18 = vector.shape_cast %14 : vector<8x128xf32> to vector<1x8x128xf32>
    tpu.vector_store %arg7[%c0_14, %c0_15, %c0_16], %18 {strides = array<i32>} : memref<8x8x128xf32, #tpu.memory_space<vmem>>, vector<1x8x128xf32>,
    %c1 = arith.constant 1 : index
    %c0_17 = arith.constant 0 : index
    %c0_18 = arith.constant 0 : index
    %19 = vector.load %arg2[%c1, %c0_17, %c0_18] : memref<8x8x32xf32, #tpu.memory_space<vmem>>, vector<1x8x32xf32>
    %20 = vector.shape_cast %19 : vector<1x8x32xf32> to vector<8x32xf32>
    %c0_19 = arith.constant 0 : index
    %c0_20 = arith.constant 0 : index
    %21 = vector.load %arg8[%c0_19, %c0_20] : memref<8x128xf32, #tpu.memory_space<vmem>>, vector<8x128xf32>
    %cst_21 = arith.constant dense<0.000000e+00> : vector<8x128xf32>
    %22 = tpu.matmul %20, %3, %cst_21 {dimension_numbers = #tpu.dot_dimension_numbers<[1], [0], [0], [1], [0, 0, 1, 1], [], []>} : vector<8x32xf32>, vector<32x128xf32>, vector<8x128xf32> -> vector<8x128xf32>
    %cst_22 = arith.constant dense<0.000000e+00> : vector<8x128xf32>
    %23 = tpu.matmul %21, %4, %cst_22 {dimension_numbers = #tpu.dot_dimension_numbers<[1], [0], [0], [1], [0, 0, 1, 1], [], []>} : vector<8x128xf32>, vector<128x128xf32>, vector<8x128xf32> -> vector<8x128xf32>
    %24 = arith.addf %22, %23 : vector<8x128xf32>
    %25 = vector.broadcast %5 : vector<1x128xf32> to vector<8x128xf32>
    %26 = arith.addf %24, %25 : vector<8x128xf32>
    %27 = math.tanh %26 : vector<8x128xf32>
    %c0_23 = arith.constant 0 : index
    %c0_24 = arith.constant 0 : index
    %28 = vector.load %arg8[%c0_23, %c0_24] : memref<8x128xf32, #tpu.memory_space<vmem>>, vector<8x128xf32>
    tpu.vector_store %arg8[%c0_23, %c0_24], %27 {strides = array<i32>} : memref<8x128xf32, #tpu.memory_space<vmem>>, vector<8x128xf32>,
    %c1_25 = arith.constant 1 : index
    %c0_26 = arith.constant 0 : index
    %c0_27 = arith.constant 0 : index
    %29 = vector.load %arg7[%c1_25, %c0_26, %c0_27] : memref<8x8x128xf32, #tpu.memory_space<vmem>>, vector<1x8x128xf32>
    %30 = vector.shape_cast %29 : vector<1x8x128xf32> to vector<8x128xf32>
    %31 = vector.shape_cast %27 : vector<8x128xf32> to vector<1x8x128xf32>
    tpu.vector_store %arg7[%c1_25, %c0_26, %c0_27], %31 {strides = array<i32>} : memref<8x8x128xf32, #tpu.memory_space<vmem>>, vector<1x8x128xf32>,
    %c2 = arith.constant 2 : index
    %c0_28 = arith.constant 0 : index
    %c0_29 = arith.constant 0 : index
    %32 = vector.load %arg2[%c2, %c0_28, %c0_29] : memref<8x8x32xf32, #tpu.memory_space<vmem>>, vector<1x8x32xf32>
    %33 = vector.shape_cast %32 : vector<1x8x32xf32> to vector<8x32xf32>
    %c0_30 = arith.constant 0 : index
    %c0_31 = arith.constant 0 : index
    %34 = vector.load %arg8[%c0_30, %c0_31] : memref<8x128xf32, #tpu.memory_space<vmem>>, vector<8x128xf32>
    %cst_32 = arith.constant dense<0.000000e+00> : vector<8x128xf32>
    %35 = tpu.matmul %33, %3, %cst_32 {dimension_numbers = #tpu.dot_dimension_numbers<[1], [0], [0], [1], [0, 0, 1, 1], [], []>} : vector<8x32xf32>, vector<32x128xf32>, vector<8x128xf32> -> vector<8x128xf32>
    %cst_33 = arith.constant dense<0.000000e+00> : vector<8x128xf32>
    %36 = tpu.matmul %34, %4, %cst_33 {dimension_numbers = #tpu.dot_dimension_numbers<[1], [0], [0], [1], [0, 0, 1, 1], [], []>} : vector<8x128xf32>, vector<128x128xf32>, vector<8x128xf32> -> vector<8x128xf32>
    %37 = arith.addf %35, %36 : vector<8x128xf32>
    %38 = vector.broadcast %5 : vector<1x128xf32> to vector<8x128xf32>
    %39 = arith.addf %37, %38 : vector<8x128xf32>
    %40 = math.tanh %39 : vector<8x128xf32>
    %c0_34 = arith.constant 0 : index
    %c0_35 = arith.constant 0 : index
    %41 = vector.load %arg8[%c0_34, %c0_35] : memref<8x128xf32, #tpu.memory_space<vmem>>, vector<8x128xf32>
    tpu.vector_store %arg8[%c0_34, %c0_35], %40 {strides = array<i32>} : memref<8x128xf32, #tpu.memory_space<vmem>>, vector<8x128xf32>,
    %c2_36 = arith.constant 2 : index
    %c0_37 = arith.constant 0 : index
    %c0_38 = arith.constant 0 : index
    %42 = vector.load %arg7[%c2_36, %c0_37, %c0_38] : memref<8x8x128xf32, #tpu.memory_space<vmem>>, vector<1x8x128xf32>
    %43 = vector.shape_cast %42 : vector<1x8x128xf32> to vector<8x128xf32>
    %44 = vector.shape_cast %40 : vector<8x128xf32> to vector<1x8x128xf32>
    tpu.vector_store %arg7[%c2_36, %c0_37, %c0_38], %44 {strides = array<i32>} : memref<8x8x128xf32, #tpu.memory_space<vmem>>, vector<1x8x128xf32>,
    %c3 = arith.constant 3 : index
    %c0_39 = arith.constant 0 : index
    %c0_40 = arith.constant 0 : index
    %45 = vector.load %arg2[%c3, %c0_39, %c0_40] : memref<8x8x32xf32, #tpu.memory_space<vmem>>, vector<1x8x32xf32>
    %46 = vector.shape_cast %45 : vector<1x8x32xf32> to vector<8x32xf32>
    %c0_41 = arith.constant 0 : index
    %c0_42 = arith.constant 0 : index
    %47 = vector.load %arg8[%c0_41, %c0_42] : memref<8x128xf32, #tpu.memory_space<vmem>>, vector<8x128xf32>
    %cst_43 = arith.constant dense<0.000000e+00> : vector<8x128xf32>
    %48 = tpu.matmul %46, %3, %cst_43 {dimension_numbers = #tpu.dot_dimension_numbers<[1], [0], [0], [1], [0, 0, 1, 1], [], []>} : vector<8x32xf32>, vector<32x128xf32>, vector<8x128xf32> -> vector<8x128xf32>
    %cst_44 = arith.constant dense<0.000000e+00> : vector<8x128xf32>
    %49 = tpu.matmul %47, %4, %cst_44 {dimension_numbers = #tpu.dot_dimension_numbers<[1], [0], [0], [1], [0, 0, 1, 1], [], []>} : vector<8x128xf32>, vector<128x128xf32>, vector<8x128xf32> -> vector<8x128xf32>
    %50 = arith.addf %48, %49 : vector<8x128xf32>
    %51 = vector.broadcast %5 : vector<1x128xf32> to vector<8x128xf32>
    %52 = arith.addf %50, %51 : vector<8x128xf32>
    %53 = math.tanh %52 : vector<8x128xf32>
    %c0_45 = arith.constant 0 : index
    %c0_46 = arith.constant 0 : index
    %54 = vector.load %arg8[%c0_45, %c0_46] : memref<8x128xf32, #tpu.memory_space<vmem>>, vector<8x128xf32>
    tpu.vector_store %arg8[%c0_45, %c0_46], %53 {strides = array<i32>} : memref<8x128xf32, #tpu.memory_space<vmem>>, vector<8x128xf32>,
    %c3_47 = arith.constant 3 : index
    %c0_48 = arith.constant 0 : index
    %c0_49 = arith.constant 0 : index
    %55 = vector.load %arg7[%c3_47, %c0_48, %c0_49] : memref<8x8x128xf32, #tpu.memory_space<vmem>>, vector<1x8x128xf32>
    %56 = vector.shape_cast %55 : vector<1x8x128xf32> to vector<8x128xf32>
    %57 = vector.shape_cast %53 : vector<8x128xf32> to vector<1x8x128xf32>
    tpu.vector_store %arg7[%c3_47, %c0_48, %c0_49], %57 {strides = array<i32>} : memref<8x8x128xf32, #tpu.memory_space<vmem>>, vector<1x8x128xf32>,
    %c4 = arith.constant 4 : index
    %c0_50 = arith.constant 0 : index
    %c0_51 = arith.constant 0 : index
    %58 = vector.load %arg2[%c4, %c0_50, %c0_51] : memref<8x8x32xf32, #tpu.memory_space<vmem>>, vector<1x8x32xf32>
    %59 = vector.shape_cast %58 : vector<1x8x32xf32> to vector<8x32xf32>
    %c0_52 = arith.constant 0 : index
    %c0_53 = arith.constant 0 : index
    %60 = vector.load %arg8[%c0_52, %c0_53] : memref<8x128xf32, #tpu.memory_space<vmem>>, vector<8x128xf32>
    %cst_54 = arith.constant dense<0.000000e+00> : vector<8x128xf32>
    %61 = tpu.matmul %59, %3, %cst_54 {dimension_numbers = #tpu.dot_dimension_numbers<[1], [0], [0], [1], [0, 0, 1, 1], [], []>} : vector<8x32xf32>, vector<32x128xf32>, vector<8x128xf32> -> vector<8x128xf32>
    %cst_55 = arith.constant dense<0.000000e+00> : vector<8x128xf32>
    %62 = tpu.matmul %60, %4, %cst_55 {dimension_numbers = #tpu.dot_dimension_numbers<[1], [0], [0], [1], [0, 0, 1, 1], [], []>} : vector<8x128xf32>, vector<128x128xf32>, vector<8x128xf32> -> vector<8x128xf32>
    %63 = arith.addf %61, %62 : vector<8x128xf32>
    %64 = vector.broadcast %5 : vector<1x128xf32> to vector<8x128xf32>
    %65 = arith.addf %63, %64 : vector<8x128xf32>
    %66 = math.tanh %65 : vector<8x128xf32>
    %c0_56 = arith.constant 0 : index
    %c0_57 = arith.constant 0 : index
    %67 = vector.load %arg8[%c0_56, %c0_57] : memref<8x128xf32, #tpu.memory_space<vmem>>, vector<8x128xf32>
    tpu.vector_store %arg8[%c0_56, %c0_57], %66 {strides = array<i32>} : memref<8x128xf32, #tpu.memory_space<vmem>>, vector<8x128xf32>,
    %c4_58 = arith.constant 4 : index
    %c0_59 = arith.constant 0 : index
    %c0_60 = arith.constant 0 : index
    %68 = vector.load %arg7[%c4_58, %c0_59, %c0_60] : memref<8x8x128xf32, #tpu.memory_space<vmem>>, vector<1x8x128xf32>
    %69 = vector.shape_cast %68 : vector<1x8x128xf32> to vector<8x128xf32>
    %70 = vector.shape_cast %66 : vector<8x128xf32> to vector<1x8x128xf32>
    tpu.vector_store %arg7[%c4_58, %c0_59, %c0_60], %70 {strides = array<i32>} : memref<8x8x128xf32, #tpu.memory_space<vmem>>, vector<1x8x128xf32>,
    %c5 = arith.constant 5 : index
    %c0_61 = arith.constant 0 : index
    %c0_62 = arith.constant 0 : index
    %71 = vector.load %arg2[%c5, %c0_61, %c0_62] : memref<8x8x32xf32, #tpu.memory_space<vmem>>, vector<1x8x32xf32>
    %72 = vector.shape_cast %71 : vector<1x8x32xf32> to vector<8x32xf32>
    %c0_63 = arith.constant 0 : index
    %c0_64 = arith.constant 0 : index
    %73 = vector.load %arg8[%c0_63, %c0_64] : memref<8x128xf32, #tpu.memory_space<vmem>>, vector<8x128xf32>
    %cst_65 = arith.constant dense<0.000000e+00> : vector<8x128xf32>
    %74 = tpu.matmul %72, %3, %cst_65 {dimension_numbers = #tpu.dot_dimension_numbers<[1], [0], [0], [1], [0, 0, 1, 1], [], []>} : vector<8x32xf32>, vector<32x128xf32>, vector<8x128xf32> -> vector<8x128xf32>
    %cst_66 = arith.constant dense<0.000000e+00> : vector<8x128xf32>
    %75 = tpu.matmul %73, %4, %cst_66 {dimension_numbers = #tpu.dot_dimension_numbers<[1], [0], [0], [1], [0, 0, 1, 1], [], []>} : vector<8x128xf32>, vector<128x128xf32>, vector<8x128xf32> -> vector<8x128xf32>
    %76 = arith.addf %74, %75 : vector<8x128xf32>
    %77 = vector.broadcast %5 : vector<1x128xf32> to vector<8x128xf32>
    %78 = arith.addf %76, %77 : vector<8x128xf32>
    %79 = math.tanh %78 : vector<8x128xf32>
    %c0_67 = arith.constant 0 : index
    %c0_68 = arith.constant 0 : index
    %80 = vector.load %arg8[%c0_67, %c0_68] : memref<8x128xf32, #tpu.memory_space<vmem>>, vector<8x128xf32>
    tpu.vector_store %arg8[%c0_67, %c0_68], %79 {strides = array<i32>} : memref<8x128xf32, #tpu.memory_space<vmem>>, vector<8x128xf32>,
    %c5_69 = arith.constant 5 : index
    %c0_70 = arith.constant 0 : index
    %c0_71 = arith.constant 0 : index
    %81 = vector.load %arg7[%c5_69, %c0_70, %c0_71] : memref<8x8x128xf32, #tpu.memory_space<vmem>>, vector<1x8x128xf32>
    %82 = vector.shape_cast %81 : vector<1x8x128xf32> to vector<8x128xf32>
    %83 = vector.shape_cast %79 : vector<8x128xf32> to vector<1x8x128xf32>
    tpu.vector_store %arg7[%c5_69, %c0_70, %c0_71], %83 {strides = array<i32>} : memref<8x8x128xf32, #tpu.memory_space<vmem>>, vector<1x8x128xf32>,
    %c6 = arith.constant 6 : index
    %c0_72 = arith.constant 0 : index
    %c0_73 = arith.constant 0 : index
    %84 = vector.load %arg2[%c6, %c0_72, %c0_73] : memref<8x8x32xf32, #tpu.memory_space<vmem>>, vector<1x8x32xf32>
    %85 = vector.shape_cast %84 : vector<1x8x32xf32> to vector<8x32xf32>
    %c0_74 = arith.constant 0 : index
    %c0_75 = arith.constant 0 : index
    %86 = vector.load %arg8[%c0_74, %c0_75] : memref<8x128xf32, #tpu.memory_space<vmem>>, vector<8x128xf32>
    %cst_76 = arith.constant dense<0.000000e+00> : vector<8x128xf32>
    %87 = tpu.matmul %85, %3, %cst_76 {dimension_numbers = #tpu.dot_dimension_numbers<[1], [0], [0], [1], [0, 0, 1, 1], [], []>} : vector<8x32xf32>, vector<32x128xf32>, vector<8x128xf32> -> vector<8x128xf32>
    %cst_77 = arith.constant dense<0.000000e+00> : vector<8x128xf32>
    %88 = tpu.matmul %86, %4, %cst_77 {dimension_numbers = #tpu.dot_dimension_numbers<[1], [0], [0], [1], [0, 0, 1, 1], [], []>} : vector<8x128xf32>, vector<128x128xf32>, vector<8x128xf32> -> vector<8x128xf32>
    %89 = arith.addf %87, %88 : vector<8x128xf32>
    %90 = vector.broadcast %5 : vector<1x128xf32> to vector<8x128xf32>
    %91 = arith.addf %89, %90 : vector<8x128xf32>
    %92 = math.tanh %91 : vector<8x128xf32>
    %c0_78 = arith.constant 0 : index
    %c0_79 = arith.constant 0 : index
    %93 = vector.load %arg8[%c0_78, %c0_79] : memref<8x128xf32, #tpu.memory_space<vmem>>, vector<8x128xf32>
    tpu.vector_store %arg8[%c0_78, %c0_79], %92 {strides = array<i32>} : memref<8x128xf32, #tpu.memory_space<vmem>>, vector<8x128xf32>,
    %c6_80 = arith.constant 6 : index
    %c0_81 = arith.constant 0 : index
    %c0_82 = arith.constant 0 : index
    %94 = vector.load %arg7[%c6_80, %c0_81, %c0_82] : memref<8x8x128xf32, #tpu.memory_space<vmem>>, vector<1x8x128xf32>
    %95 = vector.shape_cast %94 : vector<1x8x128xf32> to vector<8x128xf32>
    %96 = vector.shape_cast %92 : vector<8x128xf32> to vector<1x8x128xf32>
    tpu.vector_store %arg7[%c6_80, %c0_81, %c0_82], %96 {strides = array<i32>} : memref<8x8x128xf32, #tpu.memory_space<vmem>>, vector<1x8x128xf32>,
    %c7 = arith.constant 7 : index
    %c0_83 = arith.constant 0 : index
    %c0_84 = arith.constant 0 : index
    %97 = vector.load %arg2[%c7, %c0_83, %c0_84] : memref<8x8x32xf32, #tpu.memory_space<vmem>>, vector<1x8x32xf32>
    %98 = vector.shape_cast %97 : vector<1x8x32xf32> to vector<8x32xf32>
    %c0_85 = arith.constant 0 : index
    %c0_86 = arith.constant 0 : index
    %99 = vector.load %arg8[%c0_85, %c0_86] : memref<8x128xf32, #tpu.memory_space<vmem>>, vector<8x128xf32>
    %cst_87 = arith.constant dense<0.000000e+00> : vector<8x128xf32>
    %100 = tpu.matmul %98, %3, %cst_87 {dimension_numbers = #tpu.dot_dimension_numbers<[1], [0], [0], [1], [0, 0, 1, 1], [], []>} : vector<8x32xf32>, vector<32x128xf32>, vector<8x128xf32> -> vector<8x128xf32>
    %cst_88 = arith.constant dense<0.000000e+00> : vector<8x128xf32>
    %101 = tpu.matmul %99, %4, %cst_88 {dimension_numbers = #tpu.dot_dimension_numbers<[1], [0], [0], [1], [0, 0, 1, 1], [], []>} : vector<8x128xf32>, vector<128x128xf32>, vector<8x128xf32> -> vector<8x128xf32>
    %102 = arith.addf %100, %101 : vector<8x128xf32>
    %103 = vector.broadcast %5 : vector<1x128xf32> to vector<8x128xf32>
    %104 = arith.addf %102, %103 : vector<8x128xf32>
    %105 = math.tanh %104 : vector<8x128xf32>
    %c0_89 = arith.constant 0 : index
    %c0_90 = arith.constant 0 : index
    %106 = vector.load %arg8[%c0_89, %c0_90] : memref<8x128xf32, #tpu.memory_space<vmem>>, vector<8x128xf32>
    tpu.vector_store %arg8[%c0_89, %c0_90], %105 {strides = array<i32>} : memref<8x128xf32, #tpu.memory_space<vmem>>, vector<8x128xf32>,
    %c7_91 = arith.constant 7 : index
    %c0_92 = arith.constant 0 : index
    %c0_93 = arith.constant 0 : index
    %107 = vector.load %arg7[%c7_91, %c0_92, %c0_93] : memref<8x8x128xf32, #tpu.memory_space<vmem>>, vector<1x8x128xf32>
    %108 = vector.shape_cast %107 : vector<1x8x128xf32> to vector<8x128xf32>
    %109 = vector.shape_cast %105 : vector<8x128xf32> to vector<1x8x128xf32>
    tpu.vector_store %arg7[%c7_91, %c0_92, %c0_93], %109 {strides = array<i32>} : memref<8x8x128xf32, #tpu.memory_space<vmem>>, vector<1x8x128xf32>,
    return
  }
  func.func @transform_0(%arg0: i32, %arg1: i32) -> (i32, i32, i32) {
    %c0_i32 = arith.constant 0 : i32
    %c0_i32_0 = arith.constant 0 : i32
    return %arg1, %arg0, %c0_i32 : i32, i32, i32
  }
  func.func @transform_1(%arg0: i32, %arg1: i32) -> (i32, i32) {
    %c0_i32 = arith.constant 0 : i32
    %c0_i32_0 = arith.constant 0 : i32
    %c0_i32_1 = arith.constant 0 : i32
    return %c0_i32, %c0_i32_0 : i32, i32
  }
  func.func @transform_2(%arg0: i32, %arg1: i32) -> (i32, i32) {
    %c0_i32 = arith.constant 0 : i32
    %c0_i32_0 = arith.constant 0 : i32
    %c0_i32_1 = arith.constant 0 : i32
    return %c0_i32, %c0_i32_0 : i32, i32
  }
  func.func @transform_3(%arg0: i32, %arg1: i32) -> (i32, i32) {
    %c0_i32 = arith.constant 0 : i32
    %c0_i32_0 = arith.constant 0 : i32
    %c0_i32_1 = arith.constant 0 : i32
    return %c0_i32, %c0_i32_0 : i32, i32
  }
  func.func @transform_4(%arg0: i32, %arg1: i32) -> (i32, i32) {
    %c0_i32 = arith.constant 0 : i32
    %c0_i32_0 = arith.constant 0 : i32
    return %arg0, %c0_i32 : i32, i32
  }
  func.func @transform_5(%arg0: i32, %arg1: i32) -> (i32, i32, i32) {
    %c0_i32 = arith.constant 0 : i32
    %c0_i32_0 = arith.constant 0 : i32
    return %arg1, %arg0, %c0_i32 : i32, i32, i32
  }
}

</mosaic_0001>

<bundles_post_ra>
// kernel: tpu_custom_call.1
= control target key start
LH: loop header
LB: loop body
LE: loop exit
PB: predicated region body
PF: predicated region fallthrough
CT: control target
= control target key end

     0   :  { %10 = vsyncpa [#allocation4], 0  ;;  %s2498_s0 = inlined_call_operand.hbm [shape: f32[8,8,32], index: 0, kind: input, shape index: {}]   ;;  %s2499_s1 = inlined_call_operand.hbm [shape: f32[32,128], index: 1, kind: input, shape index: {}]   ;;  %s2500_s2 = inlined_call_operand.hbm [shape: f32[128,128], index: 2, kind: input, shape index: {}]   ;;  %s2501_s3 = inlined_call_operand.vmem [shape: f32[1,128], index: 3, kind: input, shape index: {}]   ;;  %s2502_s4 = inlined_call_operand.hbm [shape: f32[8,128], index: 4, kind: input, shape index: {}]   ;;  %s2503_s5 = inlined_call_operand.hbm [shape: f32[8,8,128], index: 5, kind: output, shape index: {}]  }
   0x1   :  { %11 = vsyncpa [#allocation7], 0 }
   0x2   :  { %12 = vsyncpa [#allocation10], 0 }
   0x3   :  { %13 = vsyncpa [#allocation5], 0  ;;  %s2019_s18 = smov [#allocation6]   ;;  %s2020_s20 = smov [#allocation3]  }
   0x4   :  { %s31_s19 = sshll.u32 %s2019_s18, 4  ;;  %s19_s21 = sshll.u32 %s2020_s20, 4  ;;  %s32_s19 = int_to_ptr.vmem [resolvable:$true] %s31_s19  ;;  %s20_s21 = int_to_ptr.vmem [resolvable:$true] %s19_s21 }
   0x5   :  { %s1919_s22 = scalar_lea.vmem %s32_s19, 512  ;;  %p1924_p1 = scmp.lt.s32.totalorder %s32_s19, %s32_s19 }
   0x6   :  { %p1920_p0 = scmp.ne.s32.totalorder %s32_s19, %s1919_s22  ;;  %p1925_p2 = scmp.lt.s32.totalorder %s1919_s22, %s1919_s22 }
   0x8   :  { %p1926_p3 = por %p1925_p2, %p1924_p1 }
   0xa   :  { %p1927_p4 = pnand %p1926_p3, %p1920_p0 }
   0xc   :  { %1930 = shalt.err (!%p1927_p4)
}
   0xd   :  { %s2021_s23 = smov 128   ;;  %s2022_s24 = smov 8  }
   0xe   :  { %37 = dma.hbm_to_vmem [thread:$0]  %s2499_s1, 512, %s32_s19, [#allocation7], %s2021_s23, %s2021_s23, %s2022_s24  }
   0xf   :  { %s1939_s27 = scalar_lea.vmem %s20_s21, 1024  ;;  %p1944_p6 = scmp.lt.s32.totalorder %s20_s21, %s20_s21 }
  0x10   :  { %p1940_p5 = scmp.ne.s32.totalorder %s20_s21, %s1939_s27  ;;  %p1945_p7 = scmp.lt.s32.totalorder %s1939_s27, %s1939_s27 }
  0x12   :  { %p1946_p8 = por %p1945_p7, %p1944_p6 }
  0x14   :  { %p1947_p9 = pnand %p1946_p8, %p1940_p5 }
  0x16   :  { %1950 = shalt.err (!%p1947_p9)
}
  0x17   :  { %25 = dma.hbm_to_vmem [thread:$0]  %s2498_s0, 1024, %s20_s21, [#allocation4], %s2021_s23, %s2021_s23, %s2022_s24  }
  0x18   :  { %s2023_s30 = smov [#allocation8]   ;;  %s2024_s7 = smov [#allocation9]  }
  0x19   :  { %s43_s6 = sshll.u32 %s2023_s30, 4  ;;  %s58_s8 = sshll.u32 %s2024_s7, 4  ;;  %s44_s6 = int_to_ptr.vmem [resolvable:$true] %s43_s6  ;;  %s59_s8 = int_to_ptr.vmem [resolvable:$true] %s58_s8 }
  0x1a   :  { %s1959_s1 = scalar_lea.vmem %s44_s6, 2048  ;;  %p1964_p11 = scmp.lt.s32.totalorder %s44_s6, %s44_s6 }
  0x1b   :  { %p1960_p10 = scmp.ne.s32.totalorder %s44_s6, %s1959_s1  ;;  %p1965_p12 = scmp.lt.s32.totalorder %s1959_s1, %s1959_s1 }
  0x1d   :  { %p1966_p13 = por %p1965_p12, %p1964_p11 }
  0x1f   :  { %p1967_p0 = pnand %p1966_p13, %p1960_p10 }
  0x21   :  { %1970 = shalt.err (!%p1967_p0)
}
  0x22   :  { %49 = dma.hbm_to_vmem [thread:$0]  %s2500_s2, 2048, %s44_s6, [#allocation7], %s2021_s23, %s2021_s23, %s2022_s24  }
  0x23   :  { %s1979_s0 = scalar_lea.vmem %s59_s8, 128  ;;  %p1984_p2 = scmp.lt.s32.totalorder %s59_s8, %s59_s8 }
  0x24   :  { %p1980_p1 = scmp.ne.s32.totalorder %s59_s8, %s1979_s0  ;;  %p1985_p3 = scmp.lt.s32.totalorder %s1979_s0, %s1979_s0 }
  0x26   :  { %p1986_p4 = por %p1985_p3, %p1984_p2 }
  0x28   :  { %p1987_p5 = pnand %p1986_p4, %p1980_p1 }
  0x2a   :  { %1990 = shalt.err (!%p1987_p5)
}
  0x2b   :  { %61 = dma.hbm_to_vmem [thread:$0]  %s2502_s4, 128, %s59_s8, [#allocation10]  }
  0x2c   :  { %2011 = dma.done.wait [#allocation4], 1024  }
  0x2d   :  { %2012 = vsyncadd [#allocation4], 4294966272 }
  0x2e   :  { %2013 = dma.done.wait [#allocation7], 2560  }
  0x2f   :  { %2014 = vsyncadd [#allocation7], 4294964736 }
  0x30   :  { %2015 = dma.done.wait [#allocation10], 128  }
  0x31   :  { %2016 = vsyncadd [#allocation10], 4294967168  ;;  %v2025_v0 = vmov 0.0   ;;  %vm2026_vm0 = vmmov 0   ;;  %v2085_v1 = vld [vmem:[#allocation8 + $0x78] sm:$0xff]  ;;  %v2087_v2 = vld [vmem:[#allocation8 + $0x70] sm:$0xff] }
  0x32   :  { %1518 = vmatprep.subr.mxu0 %v2025_v0  ;;  %1553 = vmatprep.subr.mxu1 %v2025_v0  ;;  %v2091_v3 = vld [vmem:[#allocation8 + $0x68] sm:$0xff]  ;;  %v2095_v4 = vld [vmem:[#allocation8 + $0x60] sm:$0xff]  ;;  %v2097_v5 = vld [vmem:[#allocation6 + $0x18] sm:$0xff]  ;;  %vm173_vm1 = vcmask 261120  }
  0x33   :  { %1561 = vmatprep.mubr.msk.f32.mxu1 %vm2026_vm0, %v2025_v0  ;;  %1550 = vmatprep.mubr.msk.f32.mxu0 %vm2026_vm0, %v2025_v0  ;;  %v2099_v6 = vld [vmem:[#allocation6 + $0x10] sm:$0xff]  ;;  %v2104_v7 = vld [vmem:[#allocation8 + $0x58] sm:$0xff]  ;;  %v2107_v8 = vld [vmem:[#allocation6 + $0x8] sm:$0xff] }
  0x34   :  { %1519 = vmatpush3.msra.mxu0 %v2085_v1  ;;  %1554 = vmatpush3.msra.mxu1 %v2097_v5  ;;  %v2112_v9 = vld [vmem:[#allocation8 + $0x50] sm:$0xff]  ;;  %v2115_v10 = vld [vmem:[#allocation6] sm:$0xff]  ;;  %v2120_v12 = vld [vmem:[#allocation8 + $0x48] sm:$0xff] }
  0x35   :  { %1520 = vmatprep.subr.mxu0 %v2025_v0  ;;  %1555 = vmatprep.subr.mxu1 %v2025_v0  ;;  %v101_v11 = vld [vmem:[#allocation3] sm:$0xff]  ;;  %v2132_v14 = vld [vmem:[#allocation8 + $0x38] sm:$0xff]  ;;  %v2138_v15 = vld [vmem:[#allocation8 + $0x30] sm:$0xff] }
  0x36   :  { %1521 = vmatpush3.msra.mxu0 %v2087_v2  ;;  %1556 = vmatpush3.msra.mxu1 %v2099_v6  ;;  %v2126_v13 = vld [vmem:[#allocation8 + $0x40] sm:$0xff]  ;;  %v2144_v16 = vld [vmem:[#allocation8 + $0x28] sm:$0xff]  ;;  %v2156_v18 = vld [vmem:[#allocation8 + $0x18] sm:$0xff] }
  0x37   :  { %1522 = vmatprep.subr.mxu0 %v2025_v0  ;;  %1557 = vmatprep.subr.mxu1 %v2025_v0  ;;  %v2150_v17 = vld [vmem:[#allocation8 + $0x20] sm:$0xff]  ;;  %v2162_v19 = vld [vmem:[#allocation8 + $0x10] sm:$0xff]  ;;  %v2168_v20 = vld [vmem:[#allocation8 + $0x8] sm:$0xff] }
  0x38   :  { %1523 = vmatpush3.msra.mxu0 %v2091_v3  ;;  %1558 = vmatpush3.msra.mxu1 %v2107_v8  ;;  %v2174_v21 = vld [vmem:[#allocation8] sm:$0xff]  ;;  %v258_v23 = vld [vmem:[#allocation3 + $0x8] sm:$0xff]  ;;  %v409_v34 = vld [vmem:[#allocation3 + $0x10] sm:$0xff] }
  0x39   :  { %1524 = vmatprep.subr.mxu0 %v2025_v0  ;;  %1559 = vmatprep.subr.mxu1 %v2025_v0  ;;  %v78_v22 = vld [vmem:[#allocation9] sm:$0xff]  ;;  %v560_v42 = vld [vmem:[#allocation3 + $0x18] sm:$0xff]  ;;  %v862_v58 = vld [vmem:[#allocation3 + $0x28] sm:$0xff] }
  0x3a   :  { %1525 = vmatpush3.msra.mxu0 %v2095_v4  ;;  %1560 = vmatpush3.msra.mxu1 %v2115_v10  ;;  %v2248_v26 = vld [vmem:[%s2501_s3] ss:$0 sm:$0xff]  ;;  %s2027_s3 = smov [#allocation11]  }
  0x3b   :  { %1526 = vmatprep.subr.mxu0 %v2025_v0  ;;  %1562 = vmatmul.mubr.msk.f32.vlgmr.msra.gmra.mxu1 %vm173_vm1, %v101_v11  ;;  %v711_v50 = vld [vmem:[#allocation3 + $0x20] sm:$0xff]  ;;  %s1319_s13 = sshll.u32 %s2027_s3, 4  ;;  %s1320_s13 = int_to_ptr.vmem [resolvable:$true] %s1319_s13 }
  0x3c   :  { %1527 = vmatpush3.msra.mxu0 %v2104_v7  ;;  %1564 = vmatprep.subr.mxu1 %v2025_v0  ;;  %s1991_s14 = scalar_lea.vmem %s1320_s13, 1024  ;;  %p1996_p7 = scmp.lt.s32.totalorder %s1320_s13, %s1320_s13 }
  0x3d   :  { %1528 = vmatprep.subr.mxu0 %v2025_v0  ;;  %1565 = vmatpush3.msra.mxu1 %v2085_v1  ;;  %p1992_p6 = scmp.ne.s32.totalorder %s1320_s13, %s1991_s14  ;;  %p1997_p8 = scmp.lt.s32.totalorder %s1991_s14, %s1991_s14 }
  0x3e   :  { %1529 = vmatpush3.msra.mxu0 %v2112_v9  ;;  %1566 = vmatprep.subr.mxu1 %v2025_v0 }
  0x3f   :  { %1530 = vmatprep.subr.mxu0 %v2025_v0  ;;  %1567 = vmatpush3.msra.mxu1 %v2087_v2  ;;  %p1998_p9 = por %p1997_p8, %p1996_p7 }
  0x40   :  { %1531 = vmatpush3.msra.mxu0 %v2120_v12  ;;  %1568 = vmatprep.subr.mxu1 %v2025_v0 }
  0x41   :  { %1532 = vmatprep.subr.mxu0 %v2025_v0  ;;  %1569 = vmatpush3.msra.mxu1 %v2091_v3  ;;  %p1999_p10 = pnand %p1998_p9, %p1992_p6 }
  0x42   :  { %1533 = vmatpush3.msra.mxu0 %v2126_v13  ;;  %1570 = vmatprep.subr.mxu1 %v2025_v0 }
  0x43   :  { %1534 = vmatprep.subr.mxu0 %v2025_v0  ;;  %1571 = vmatpush3.msra.mxu1 %v2095_v4 }
  0x44   :  { %1535 = vmatpush3.msra.mxu0 %v2132_v14  ;;  %1572 = vmatprep.subr.mxu1 %v2025_v0 }
  0x45   :  { %1536 = vmatprep.subr.mxu0 %v2025_v0  ;;  %1573 = vmatpush3.msra.mxu1 %v2104_v7 }
  0x46   :  { %1537 = vmatpush3.msra.mxu0 %v2138_v15  ;;  %1574 = vmatprep.subr.mxu1 %v2025_v0 }
  0x47   :  { %1538 = vmatprep.subr.mxu0 %v2025_v0  ;;  %1575 = vmatpush3.msra.mxu1 %v2112_v9 }
  0x48   :  { %1539 = vmatpush3.msra.mxu0 %v2144_v16  ;;  %1576 = vmatprep.subr.mxu1 %v2025_v0 }
  0x49   :  { %1540 = vmatprep.subr.mxu0 %v2025_v0  ;;  %1577 = vmatpush3.msra.mxu1 %v2120_v12 }
  0x4a   :  { %1541 = vmatpush3.msra.mxu0 %v2150_v17  ;;  %1578 = vmatprep.subr.mxu1 %v2025_v0 }
  0x4b   :  { %1542 = vmatprep.subr.mxu0 %v2025_v0  ;;  %1579 = vmatpush3.msra.mxu1 %v2126_v13 }
  0x4c   :  { %1543 = vmatpush3.msra.mxu0 %v2156_v18  ;;  %1580 = vmatprep.subr.mxu1 %v2025_v0 }
  0x4d   :  { %1544 = vmatprep.subr.mxu0 %v2025_v0  ;;  %1581 = vmatpush3.msra.mxu1 %v2132_v14 }
  0x4e   :  { %1545 = vmatpush3.msra.mxu0 %v2162_v19  ;;  %1582 = vmatprep.subr.mxu1 %v2025_v0 }
  0x4f   :  { %1546 = vmatprep.subr.mxu0 %v2025_v0  ;;  %1583 = vmatpush3.msra.mxu1 %v2138_v15 }
  0x50   :  { %1547 = vmatpush3.msra.mxu0 %v2168_v20  ;;  %1584 = vmatprep.subr.mxu1 %v2025_v0 }
  0x51   :  { %1548 = vmatprep.subr.mxu0 %v2025_v0  ;;  %1585 = vmatpush3.msra.mxu1 %v2144_v16 }
  0x52   :  { %1549 = vmatpush3.msra.mxu0 %v2174_v21  ;;  %1586 = vmatprep.subr.mxu1 %v2025_v0 }
  0x53   :  { %1551 = vmatmul.mubr.f32.vlgmr.msra.gmra.mxu0 %v78_v22  ;;  %1599 = vmatprep.subr.mxu0 %v2025_v0 }
  0x54   :  { %1600 = vmatpush3.msra.mxu0 %v2097_v5  ;;  %1587 = vmatpush3.msra.mxu1 %v2150_v17 }
  0x55   :  { %1601 = vmatprep.subr.mxu0 %v2025_v0  ;;  %1588 = vmatprep.subr.mxu1 %v2025_v0 }
  0x56   :  { %1602 = vmatpush3.msra.mxu0 %v2099_v6  ;;  %1589 = vmatpush3.msra.mxu1 %v2156_v18 }
  0x57   :  { %1603 = vmatprep.subr.mxu0 %v2025_v0  ;;  %1590 = vmatprep.subr.mxu1 %v2025_v0 }
  0x58   :  { %1604 = vmatpush3.msra.mxu0 %v2107_v8  ;;  %1591 = vmatpush3.msra.mxu1 %v2162_v19 }
  0x59   :  { %1605 = vmatprep.subr.mxu0 %v2025_v0  ;;  %1592 = vmatprep.subr.mxu1 %v2025_v0 }
  0x5a   :  { %1606 = vmatpush3.msra.mxu0 %v2115_v10  ;;  %1607 = vmatprep.mubr.msk.f32.mxu0 %vm2026_vm0, %v2025_v0 }
  0x5b   :  { %1593 = vmatpush3.msra.mxu1 %v2168_v20  ;;  %1596 = vmatprep.mubr.msk.f32.mxu1 %vm2026_vm0, %v2025_v0 }
  0x5c   :  { %1594 = vmatprep.subr.mxu1 %v2025_v0  ;;  %1610 = vmatprep.subr.mxu0 %v2025_v0 }
  0x5d   :  { %1595 = vmatpush3.msra.mxu1 %v2174_v21  ;;  %1608 = vmatmul.mubr.msk.f32.vlgmr.msra.gmra.mxu0 %vm173_vm1, %v258_v23  ;;  %v1013_v23 = vld [vmem:[#allocation3 + $0x30] sm:$0xff] }
  0x5e   :  { %1645 = vmatprep.subr.mxu1 %v2025_v0  ;;  %1611 = vmatpush3.msra.mxu0 %v2085_v1 }
  0x5f   :  { %1642 = vmatprep.mubr.msk.f32.mxu0 %vm2026_vm0, %v2025_v0  ;;  %1612 = vmatprep.subr.mxu0 %v2025_v0 }
  0x60   :  { %1613 = vmatpush3.msra.mxu0 %v2087_v2 }
  0x61   :  { %1614 = vmatprep.subr.mxu0 %v2025_v0 }
  0x62   :  { %1615 = vmatpush3.msra.mxu0 %v2091_v3 }
  0x63   :  { %1616 = vmatprep.subr.mxu0 %v2025_v0 }
  0x64   :  { %1617 = vmatpush3.msra.mxu0 %v2095_v4 }
  0x65   :  { %1618 = vmatprep.subr.mxu0 %v2025_v0 }
  0x66   :  { %1619 = vmatpush3.msra.mxu0 %v2104_v7 }
  0x67   :  { %1620 = vmatprep.subr.mxu0 %v2025_v0 }
  0x68   :  { %1621 = vmatpush3.msra.mxu0 %v2112_v9 }
  0x69   :  { %1622 = vmatprep.subr.mxu0 %v2025_v0 }
  0x6a   :  { %1623 = vmatpush3.msra.mxu0 %v2120_v12 }
  0x6b   :  { %1624 = vmatprep.subr.mxu0 %v2025_v0 }
  0x6c   :  { %1625 = vmatpush3.msra.mxu0 %v2126_v13 }
  0x6d   :  { %1626 = vmatprep.subr.mxu0 %v2025_v0 }
  0x6e   :  { %1627 = vmatpush3.msra.mxu0 %v2132_v14 }
  0x6f   :  { %1628 = vmatprep.subr.mxu0 %v2025_v0 }
  0x70   :  { %1629 = vmatpush3.msra.mxu0 %v2138_v15 }
  0x71   :  { %1630 = vmatprep.subr.mxu0 %v2025_v0 }
  0x72   :  { %1631 = vmatpush3.msra.mxu0 %v2144_v16 }
  0x73   :  { %1632 = vmatprep.subr.mxu0 %v2025_v0 }
  0x74   :  { %1633 = vmatpush3.msra.mxu0 %v2150_v17 }
  0x75   :  { %1634 = vmatprep.subr.mxu0 %v2025_v0 }
  0x76   :  { %1635 = vmatpush3.msra.mxu0 %v2156_v18 }
  0x77   :  { %1636 = vmatprep.subr.mxu0 %v2025_v0 }
  0x78   :  { %1637 = vmatpush3.msra.mxu0 %v2162_v19 }
  0x79   :  { %1638 = vmatprep.subr.mxu0 %v2025_v0 }
  0x7a   :  { %1639 = vmatpush3.msra.mxu0 %v2168_v20 }
  0x7b   :  { %1640 = vmatprep.subr.mxu0 %v2025_v0 }
  0x7c   :  { %1641 = vmatpush3.msra.mxu0 %v2174_v21 }
  0x7d   :  { %1691 = vmatprep.subr.mxu0 %v2025_v0 }
  0xfb   :  { %v243_v24 = vpop.f32.mrf.mxu1 }
  0xfd   :  { %v1563_v25 = vpop.f32.mrf.mxu1 }
 0x113   :  { %v169_v27 = vpop.f32.mrf.mxu0 }
 0x114   :  { %v244_v28 = vadd.f32 %v243_v24, %v169_v27 }
 0x115   :  { %v1552_v29 = vpop.f32.mrf.mxu0 }
 0x116   :  { %v253_v30 = vadd.f32 %v2248_v26, %v244_v28 }
 0x118   :  { %1895 = vtanh.f32 %v253_v30 }
 0x11d   :  { %v399_v32 = vpop.f32.mrf.mxu0 }
 0x11f   :  { %v1609_v33 = vpop.f32.mrf.mxu0 }
 0x125   :  { %v1896_v31 = vpop.eup %1895 }
 0x126   :  { %256 = vst [vmem:[#allocation11] sm:$0xff] %v1896_v31  ;;  %1597 = vmatmul.mubr.f32.vlgmr.msra.gmra.mxu1 %v1896_v31 }
 0x127   :  { %1646 = vmatpush3.msra.mxu1 %v2097_v5  ;;  %1653 = vmatprep.mubr.msk.f32.mxu1 %vm2026_vm0, %v2025_v0 }
 0x128   :  { %1647 = vmatprep.subr.mxu1 %v2025_v0 }
 0x129   :  { %1648 = vmatpush3.msra.mxu1 %v2099_v6 }
 0x12a   :  { %1649 = vmatprep.subr.mxu1 %v2025_v0 }
 0x12b   :  { %1650 = vmatpush3.msra.mxu1 %v2107_v8 }
 0x12c   :  { %1651 = vmatprep.subr.mxu1 %v2025_v0 }
 0x12d   :  { %1652 = vmatpush3.msra.mxu1 %v2115_v10 }
 0x12e   :  { %1656 = vmatprep.subr.mxu1 %v2025_v0  ;;  %1654 = vmatmul.mubr.msk.f32.vlgmr.msra.gmra.mxu1 %vm173_vm1, %v409_v34 }
 0x12f   :  { %1657 = vmatpush3.msra.mxu1 %v2085_v1  ;;  %1688 = vmatprep.mubr.msk.f32.mxu1 %vm2026_vm0, %v2025_v0 }
 0x130   :  { %1658 = vmatprep.subr.mxu1 %v2025_v0 }
 0x131   :  { %1659 = vmatpush3.msra.mxu1 %v2087_v2 }
 0x132   :  { %1660 = vmatprep.subr.mxu1 %v2025_v0 }
 0x133   :  { %1661 = vmatpush3.msra.mxu1 %v2091_v3 }
 0x134   :  { %1662 = vmatprep.subr.mxu1 %v2025_v0 }
 0x135   :  { %1663 = vmatpush3.msra.mxu1 %v2095_v4 }
 0x136   :  { %1664 = vmatprep.subr.mxu1 %v2025_v0 }
 0x137   :  { %1665 = vmatpush3.msra.mxu1 %v2104_v7 }
 0x138   :  { %1666 = vmatprep.subr.mxu1 %v2025_v0 }
 0x139   :  { %1667 = vmatpush3.msra.mxu1 %v2112_v9 }
 0x13a   :  { %1668 = vmatprep.subr.mxu1 %v2025_v0 }
 0x13b   :  { %1669 = vmatpush3.msra.mxu1 %v2120_v12 }
 0x13c   :  { %1670 = vmatprep.subr.mxu1 %v2025_v0 }
 0x13d   :  { %1671 = vmatpush3.msra.mxu1 %v2126_v13 }
 0x13e   :  { %1672 = vmatprep.subr.mxu1 %v2025_v0 }
 0x13f   :  { %1673 = vmatpush3.msra.mxu1 %v2132_v14 }
 0x140   :  { %1674 = vmatprep.subr.mxu1 %v2025_v0 }
 0x141   :  { %1675 = vmatpush3.msra.mxu1 %v2138_v15 }
 0x142   :  { %1676 = vmatprep.subr.mxu1 %v2025_v0 }
 0x143   :  { %1677 = vmatpush3.msra.mxu1 %v2144_v16 }
 0x144   :  { %1678 = vmatprep.subr.mxu1 %v2025_v0 }
 0x145   :  { %1679 = vmatpush3.msra.mxu1 %v2150_v17 }
 0x146   :  { %1680 = vmatprep.subr.mxu1 %v2025_v0 }
 0x147   :  { %1681 = vmatpush3.msra.mxu1 %v2156_v18 }
 0x148   :  { %1682 = vmatprep.subr.mxu1 %v2025_v0 }
 0x149   :  { %1683 = vmatpush3.msra.mxu1 %v2162_v19 }
 0x14a   :  { %1684 = vmatprep.subr.mxu1 %v2025_v0 }
 0x14b   :  { %1685 = vmatpush3.msra.mxu1 %v2168_v20 }
 0x14c   :  { %1686 = vmatprep.subr.mxu1 %v2025_v0 }
 0x14d   :  { %1687 = vmatpush3.msra.mxu1 %v2174_v21 }
 0x14e   :  { %1737 = vmatprep.subr.mxu1 %v2025_v0 }
 0x1e6   :  { %v326_v35 = vpop.f32.mrf.mxu1 }
 0x1e7   :  { %v400_v36 = vadd.f32 %v399_v32, %v326_v35 }
 0x1e8   :  { %v1598_v37 = vpop.f32.mrf.mxu1 }
 0x1e9   :  { %v403_v38 = vadd.f32 %v2248_v26, %v400_v36 }
 0x1eb   :  { %1897 = vtanh.f32 %v403_v38 }
 0x1ee   :  { %v550_v40 = vpop.f32.mrf.mxu1 }
 0x1f0   :  { %v1655_v41 = vpop.f32.mrf.mxu1 }
 0x1f8   :  { %v1898_v39 = vpop.eup %1897 }
 0x1f9   :  { %407 = vst [vmem:[#allocation11 + $0x8] sm:$0xff] %v1898_v39  ;;  %1643 = vmatmul.mubr.f32.vlgmr.msra.gmra.mxu0 %v1898_v39 }
 0x1fa   :  { %1692 = vmatpush3.msra.mxu0 %v2097_v5  ;;  %1699 = vmatprep.mubr.msk.f32.mxu0 %vm2026_vm0, %v2025_v0 }
 0x1fb   :  { %1693 = vmatprep.subr.mxu0 %v2025_v0 }
 0x1fc   :  { %1694 = vmatpush3.msra.mxu0 %v2099_v6 }
 0x1fd   :  { %1695 = vmatprep.subr.mxu0 %v2025_v0 }
 0x1fe   :  { %1696 = vmatpush3.msra.mxu0 %v2107_v8 }
 0x1ff   :  { %1697 = vmatprep.subr.mxu0 %v2025_v0 }
 0x200   :  { %1698 = vmatpush3.msra.mxu0 %v2115_v10 }
 0x201   :  { %1702 = vmatprep.subr.mxu0 %v2025_v0  ;;  %1700 = vmatmul.mubr.msk.f32.vlgmr.msra.gmra.mxu0 %vm173_vm1, %v560_v42 }
 0x202   :  { %1703 = vmatpush3.msra.mxu0 %v2085_v1  ;;  %1734 = vmatprep.mubr.msk.f32.mxu0 %vm2026_vm0, %v2025_v0 }
 0x203   :  { %1704 = vmatprep.subr.mxu0 %v2025_v0 }
 0x204   :  { %1705 = vmatpush3.msra.mxu0 %v2087_v2 }
 0x205   :  { %1706 = vmatprep.subr.mxu0 %v2025_v0 }
 0x206   :  { %1707 = vmatpush3.msra.mxu0 %v2091_v3 }
 0x207   :  { %1708 = vmatprep.subr.mxu0 %v2025_v0 }
 0x208   :  { %1709 = vmatpush3.msra.mxu0 %v2095_v4 }
 0x209   :  { %1710 = vmatprep.subr.mxu0 %v2025_v0 }
 0x20a   :  { %1711 = vmatpush3.msra.mxu0 %v2104_v7 }
 0x20b   :  { %1712 = vmatprep.subr.mxu0 %v2025_v0 }
 0x20c   :  { %1713 = vmatpush3.msra.mxu0 %v2112_v9 }
 0x20d   :  { %1714 = vmatprep.subr.mxu0 %v2025_v0 }
 0x20e   :  { %1715 = vmatpush3.msra.mxu0 %v2120_v12 }
 0x20f   :  { %1716 = vmatprep.subr.mxu0 %v2025_v0 }
 0x210   :  { %1717 = vmatpush3.msra.mxu0 %v2126_v13 }
 0x211   :  { %1718 = vmatprep.subr.mxu0 %v2025_v0 }
 0x212   :  { %1719 = vmatpush3.msra.mxu0 %v2132_v14 }
 0x213   :  { %1720 = vmatprep.subr.mxu0 %v2025_v0 }
 0x214   :  { %1721 = vmatpush3.msra.mxu0 %v2138_v15 }
 0x215   :  { %1722 = vmatprep.subr.mxu0 %v2025_v0 }
 0x216   :  { %1723 = vmatpush3.msra.mxu0 %v2144_v16 }
 0x217   :  { %1724 = vmatprep.subr.mxu0 %v2025_v0 }
 0x218   :  { %1725 = vmatpush3.msra.mxu0 %v2150_v17 }
 0x219   :  { %1726 = vmatprep.subr.mxu0 %v2025_v0 }
 0x21a   :  { %1727 = vmatpush3.msra.mxu0 %v2156_v18 }
 0x21b   :  { %1728 = vmatprep.subr.mxu0 %v2025_v0 }
 0x21c   :  { %1729 = vmatpush3.msra.mxu0 %v2162_v19 }
 0x21d   :  { %1730 = vmatprep.subr.mxu0 %v2025_v0 }
 0x21e   :  { %1731 = vmatpush3.msra.mxu0 %v2168_v20 }
 0x21f   :  { %1732 = vmatprep.subr.mxu0 %v2025_v0 }
 0x220   :  { %1733 = vmatpush3.msra.mxu0 %v2174_v21 }
 0x221   :  { %1783 = vmatprep.subr.mxu0 %v2025_v0 }
 0x2b9   :  { %v477_v43 = vpop.f32.mrf.mxu0 }
 0x2ba   :  { %v551_v44 = vadd.f32 %v550_v40, %v477_v43 }
 0x2bb   :  { %v1644_v45 = vpop.f32.mrf.mxu0 }
 0x2bc   :  { %v554_v46 = vadd.f32 %v2248_v26, %v551_v44 }
 0x2be   :  { %1899 = vtanh.f32 %v554_v46 }
 0x2c1   :  { %v701_v48 = vpop.f32.mrf.mxu0 }
 0x2c3   :  { %v1701_v49 = vpop.f32.mrf.mxu0 }
 0x2cb   :  { %v1900_v47 = vpop.eup %1899 }
 0x2cc   :  { %558 = vst [vmem:[#allocation11 + $0x10] sm:$0xff] %v1900_v47  ;;  %1689 = vmatmul.mubr.f32.vlgmr.msra.gmra.mxu1 %v1900_v47 }
 0x2cd   :  { %1738 = vmatpush3.msra.mxu1 %v2097_v5  ;;  %1745 = vmatprep.mubr.msk.f32.mxu1 %vm2026_vm0, %v2025_v0 }
 0x2ce   :  { %1739 = vmatprep.subr.mxu1 %v2025_v0 }
 0x2cf   :  { %1740 = vmatpush3.msra.mxu1 %v2099_v6 }
 0x2d0   :  { %1741 = vmatprep.subr.mxu1 %v2025_v0 }
 0x2d1   :  { %1742 = vmatpush3.msra.mxu1 %v2107_v8 }
 0x2d2   :  { %1743 = vmatprep.subr.mxu1 %v2025_v0 }
 0x2d3   :  { %1744 = vmatpush3.msra.mxu1 %v2115_v10 }
 0x2d4   :  { %1748 = vmatprep.subr.mxu1 %v2025_v0  ;;  %1746 = vmatmul.mubr.msk.f32.vlgmr.msra.gmra.mxu1 %vm173_vm1, %v711_v50 }
 0x2d5   :  { %1749 = vmatpush3.msra.mxu1 %v2085_v1  ;;  %1780 = vmatprep.mubr.msk.f32.mxu1 %vm2026_vm0, %v2025_v0 }
 0x2d6   :  { %1750 = vmatprep.subr.mxu1 %v2025_v0 }
 0x2d7   :  { %1751 = vmatpush3.msra.mxu1 %v2087_v2 }
 0x2d8   :  { %1752 = vmatprep.subr.mxu1 %v2025_v0 }
 0x2d9   :  { %1753 = vmatpush3.msra.mxu1 %v2091_v3 }
 0x2da   :  { %1754 = vmatprep.subr.mxu1 %v2025_v0 }
 0x2db   :  { %1755 = vmatpush3.msra.mxu1 %v2095_v4 }
 0x2dc   :  { %1756 = vmatprep.subr.mxu1 %v2025_v0 }
 0x2dd   :  { %1757 = vmatpush3.msra.mxu1 %v2104_v7 }
 0x2de   :  { %1758 = vmatprep.subr.mxu1 %v2025_v0 }
 0x2df   :  { %1759 = vmatpush3.msra.mxu1 %v2112_v9 }
 0x2e0   :  { %1760 = vmatprep.subr.mxu1 %v2025_v0 }
 0x2e1   :  { %1761 = vmatpush3.msra.mxu1 %v2120_v12 }
 0x2e2   :  { %1762 = vmatprep.subr.mxu1 %v2025_v0 }
 0x2e3   :  { %1763 = vmatpush3.msra.mxu1 %v2126_v13 }
 0x2e4   :  { %1764 = vmatprep.subr.mxu1 %v2025_v0 }
 0x2e5   :  { %1765 = vmatpush3.msra.mxu1 %v2132_v14 }
 0x2e6   :  { %1766 = vmatprep.subr.mxu1 %v2025_v0 }
 0x2e7   :  { %1767 = vmatpush3.msra.mxu1 %v2138_v15 }
 0x2e8   :  { %1768 = vmatprep.subr.mxu1 %v2025_v0 }
 0x2e9   :  { %1769 = vmatpush3.msra.mxu1 %v2144_v16 }
 0x2ea   :  { %1770 = vmatprep.subr.mxu1 %v2025_v0 }
 0x2eb   :  { %1771 = vmatpush3.msra.mxu1 %v2150_v17 }
 0x2ec   :  { %1772 = vmatprep.subr.mxu1 %v2025_v0 }
 0x2ed   :  { %1773 = vmatpush3.msra.mxu1 %v2156_v18 }
 0x2ee   :  { %1774 = vmatprep.subr.mxu1 %v2025_v0 }
 0x2ef   :  { %1775 = vmatpush3.msra.mxu1 %v2162_v19 }
 0x2f0   :  { %1776 = vmatprep.subr.mxu1 %v2025_v0 }
 0x2f1   :  { %1777 = vmatpush3.msra.mxu1 %v2168_v20 }
 0x2f2   :  { %1778 = vmatprep.subr.mxu1 %v2025_v0 }
 0x2f3   :  { %1779 = vmatpush3.msra.mxu1 %v2174_v21 }
 0x2f4   :  { %1829 = vmatprep.subr.mxu1 %v2025_v0 }
 0x38c   :  { %v628_v51 = vpop.f32.mrf.mxu1 }
 0x38d   :  { %v702_v52 = vadd.f32 %v701_v48, %v628_v51 }
 0x38e   :  { %v1690_v53 = vpop.f32.mrf.mxu1 }
 0x38f   :  { %v705_v54 = vadd.f32 %v2248_v26, %v702_v52 }
 0x391   :  { %1901 = vtanh.f32 %v705_v54 }
 0x394   :  { %v852_v56 = vpop.f32.mrf.mxu1 }
 0x396   :  { %v1747_v57 = vpop.f32.mrf.mxu1 }
 0x39e   :  { %v1902_v55 = vpop.eup %1901 }
 0x39f   :  { %709 = vst [vmem:[#allocation11 + $0x18] sm:$0xff] %v1902_v55  ;;  %1735 = vmatmul.mubr.f32.vlgmr.msra.gmra.mxu0 %v1902_v55 }
 0x3a0   :  { %1784 = vmatpush3.msra.mxu0 %v2097_v5  ;;  %1791 = vmatprep.mubr.msk.f32.mxu0 %vm2026_vm0, %v2025_v0 }
 0x3a1   :  { %1785 = vmatprep.subr.mxu0 %v2025_v0 }
 0x3a2   :  { %1786 = vmatpush3.msra.mxu0 %v2099_v6 }
 0x3a3   :  { %1787 = vmatprep.subr.mxu0 %v2025_v0 }
 0x3a4   :  { %1788 = vmatpush3.msra.mxu0 %v2107_v8 }
 0x3a5   :  { %1789 = vmatprep.subr.mxu0 %v2025_v0 }
 0x3a6   :  { %1790 = vmatpush3.msra.mxu0 %v2115_v10 }
 0x3a7   :  { %1794 = vmatprep.subr.mxu0 %v2025_v0  ;;  %1792 = vmatmul.mubr.msk.f32.vlgmr.msra.gmra.mxu0 %vm173_vm1, %v862_v58 }
 0x3a8   :  { %1795 = vmatpush3.msra.mxu0 %v2085_v1  ;;  %1826 = vmatprep.mubr.msk.f32.mxu0 %vm2026_vm0, %v2025_v0 }
 0x3a9   :  { %1796 = vmatprep.subr.mxu0 %v2025_v0 }
 0x3aa   :  { %1797 = vmatpush3.msra.mxu0 %v2087_v2 }
 0x3ab   :  { %1798 = vmatprep.subr.mxu0 %v2025_v0 }
 0x3ac   :  { %1799 = vmatpush3.msra.mxu0 %v2091_v3 }
 0x3ad   :  { %1800 = vmatprep.subr.mxu0 %v2025_v0 }
 0x3ae   :  { %1801 = vmatpush3.msra.mxu0 %v2095_v4 }
 0x3af   :  { %1802 = vmatprep.subr.mxu0 %v2025_v0 }
 0x3b0   :  { %1803 = vmatpush3.msra.mxu0 %v2104_v7 }
 0x3b1   :  { %1804 = vmatprep.subr.mxu0 %v2025_v0 }
 0x3b2   :  { %1805 = vmatpush3.msra.mxu0 %v2112_v9 }
 0x3b3   :  { %1806 = vmatprep.subr.mxu0 %v2025_v0 }
 0x3b4   :  { %1807 = vmatpush3.msra.mxu0 %v2120_v12 }
 0x3b5   :  { %1808 = vmatprep.subr.mxu0 %v2025_v0 }
 0x3b6   :  { %1809 = vmatpush3.msra.mxu0 %v2126_v13 }
 0x3b7   :  { %1810 = vmatprep.subr.mxu0 %v2025_v0 }
 0x3b8   :  { %1811 = vmatpush3.msra.mxu0 %v2132_v14 }
 0x3b9   :  { %1812 = vmatprep.subr.mxu0 %v2025_v0 }
 0x3ba   :  { %1813 = vmatpush3.msra.mxu0 %v2138_v15 }
 0x3bb   :  { %1814 = vmatprep.subr.mxu0 %v2025_v0 }
 0x3bc   :  { %1815 = vmatpush3.msra.mxu0 %v2144_v16 }
 0x3bd   :  { %1816 = vmatprep.subr.mxu0 %v2025_v0 }
 0x3be   :  { %1817 = vmatpush3.msra.mxu0 %v2150_v17 }
 0x3bf   :  { %1818 = vmatprep.subr.mxu0 %v2025_v0 }
 0x3c0   :  { %1819 = vmatpush3.msra.mxu0 %v2156_v18 }
 0x3c1   :  { %1820 = vmatprep.subr.mxu0 %v2025_v0 }
 0x3c2   :  { %1821 = vmatpush3.msra.mxu0 %v2162_v19 }
 0x3c3   :  { %1822 = vmatprep.subr.mxu0 %v2025_v0 }
 0x3c4   :  { %1823 = vmatpush3.msra.mxu0 %v2168_v20 }
 0x3c5   :  { %1824 = vmatprep.subr.mxu0 %v2025_v0 }
 0x3c6   :  { %1825 = vmatpush3.msra.mxu0 %v2174_v21 }
 0x3c7   :  { %1875 = vmatprep.subr.mxu0 %v2025_v0 }
 0x45f   :  { %v779_v59 = vpop.f32.mrf.mxu0 }
 0x460   :  { %v853_v60 = vadd.f32 %v852_v56, %v779_v59 }
 0x461   :  { %v1736_v61 = vpop.f32.mrf.mxu0 }
 0x462   :  { %v856_v62 = vadd.f32 %v2248_v26, %v853_v60 }
 0x464   :  { %1903 = vtanh.f32 %v856_v62 }
 0x467   :  { %v1003_v11 = vpop.f32.mrf.mxu0 }
 0x469   :  { %v1793_v22 = vpop.f32.mrf.mxu0 }
 0x471   :  { %v1904_v63 = vpop.eup %1903 }
 0x472   :  { %860 = vst [vmem:[#allocation11 + $0x20] sm:$0xff] %v1904_v63  ;;  %1781 = vmatmul.mubr.f32.vlgmr.msra.gmra.mxu1 %v1904_v63 }
 0x473   :  { %1830 = vmatpush3.msra.mxu1 %v2097_v5  ;;  %1837 = vmatprep.mubr.msk.f32.mxu1 %vm2026_vm0, %v2025_v0 }
 0x474   :  { %1831 = vmatprep.subr.mxu1 %v2025_v0 }
 0x475   :  { %1832 = vmatpush3.msra.mxu1 %v2099_v6 }
 0x476   :  { %1833 = vmatprep.subr.mxu1 %v2025_v0 }
 0x477   :  { %1834 = vmatpush3.msra.mxu1 %v2107_v8 }
 0x478   :  { %1835 = vmatprep.subr.mxu1 %v2025_v0 }
 0x479   :  { %1836 = vmatpush3.msra.mxu1 %v2115_v10 }
 0x47a   :  { %1840 = vmatprep.subr.mxu1 %v2025_v0  ;;  %1838 = vmatmul.mubr.msk.f32.vlgmr.msra.gmra.mxu1 %vm173_vm1, %v1013_v23 }
 0x47b   :  { %1841 = vmatpush3.msra.mxu1 %v2085_v1  ;;  %1872 = vmatprep.mubr.msk.f32.mxu1 %vm2026_vm0, %v2025_v0 }
 0x47c   :  { %1842 = vmatprep.subr.mxu1 %v2025_v0 }
 0x47d   :  { %1843 = vmatpush3.msra.mxu1 %v2087_v2 }
 0x47e   :  { %1844 = vmatprep.subr.mxu1 %v2025_v0 }
 0x47f   :  { %1845 = vmatpush3.msra.mxu1 %v2091_v3 }
 0x480   :  { %1846 = vmatprep.subr.mxu1 %v2025_v0 }
 0x481   :  { %1847 = vmatpush3.msra.mxu1 %v2095_v4 }
 0x482   :  { %1848 = vmatprep.subr.mxu1 %v2025_v0 }
 0x483   :  { %1849 = vmatpush3.msra.mxu1 %v2104_v7 }
 0x484   :  { %1850 = vmatprep.subr.mxu1 %v2025_v0 }
 0x485   :  { %1851 = vmatpush3.msra.mxu1 %v2112_v9 }
 0x486   :  { %1852 = vmatprep.subr.mxu1 %v2025_v0 }
 0x487   :  { %1853 = vmatpush3.msra.mxu1 %v2120_v12 }
 0x488   :  { %1854 = vmatprep.subr.mxu1 %v2025_v0 }
 0x489   :  { %1855 = vmatpush3.msra.mxu1 %v2126_v13  ;;  %v1164_v13 = vld [vmem:[#allocation3 + $0x38] sm:$0xff] }
 0x48a   :  { %1856 = vmatprep.subr.mxu1 %v2025_v0 }
 0x48b   :  { %1857 = vmatpush3.msra.mxu1 %v2132_v14 }
 0x48c   :  { %1858 = vmatprep.subr.mxu1 %v2025_v0 }
 0x48d   :  { %1859 = vmatpush3.msra.mxu1 %v2138_v15 }
 0x48e   :  { %1860 = vmatprep.subr.mxu1 %v2025_v0 }
 0x48f   :  { %1861 = vmatpush3.msra.mxu1 %v2144_v16 }
 0x490   :  { %1862 = vmatprep.subr.mxu1 %v2025_v0 }
 0x491   :  { %1863 = vmatpush3.msra.mxu1 %v2150_v17 }
 0x492   :  { %1864 = vmatprep.subr.mxu1 %v2025_v0 }
 0x493   :  { %1865 = vmatpush3.msra.mxu1 %v2156_v18 }
 0x494   :  { %1866 = vmatprep.subr.mxu1 %v2025_v0 }
 0x495   :  { %1867 = vmatpush3.msra.mxu1 %v2162_v19 }
 0x496   :  { %1868 = vmatprep.subr.mxu1 %v2025_v0 }
 0x497   :  { %1869 = vmatpush3.msra.mxu1 %v2168_v20 }
 0x498   :  { %1870 = vmatprep.subr.mxu1 %v2025_v0 }
 0x499   :  { %1871 = vmatpush3.msra.mxu1 %v2174_v21 }
 0x532   :  { %v930_v1 = vpop.f32.mrf.mxu1 }
 0x533   :  { %v1004_v2 = vadd.f32 %v1003_v11, %v930_v1 }
 0x534   :  { %v1782_v3 = vpop.f32.mrf.mxu1 }
 0x535   :  { %v1007_v4 = vadd.f32 %v2248_v26, %v1004_v2 }
 0x537   :  { %1905 = vtanh.f32 %v1007_v4 }
 0x53a   :  { %v1154_v9 = vpop.f32.mrf.mxu1 }
 0x53c   :  { %v1839_v12 = vpop.f32.mrf.mxu1 }
 0x544   :  { %v1906_v7 = vpop.eup %1905 }
 0x545   :  { %1011 = vst [vmem:[#allocation11 + $0x28] sm:$0xff] %v1906_v7  ;;  %1827 = vmatmul.mubr.f32.vlgmr.msra.gmra.mxu0 %v1906_v7 }
 0x546   :  { %1876 = vmatpush3.msra.mxu0 %v2097_v5  ;;  %1883 = vmatprep.mubr.msk.f32.mxu0 %vm2026_vm0, %v2025_v0 }
 0x547   :  { %1877 = vmatprep.subr.mxu0 %v2025_v0 }
 0x548   :  { %1878 = vmatpush3.msra.mxu0 %v2099_v6 }
 0x549   :  { %1879 = vmatprep.subr.mxu0 %v2025_v0 }
 0x54a   :  { %1880 = vmatpush3.msra.mxu0 %v2107_v8 }
 0x54b   :  { %1881 = vmatprep.subr.mxu0 %v2025_v0 }
 0x54c   :  { %1882 = vmatpush3.msra.mxu0 %v2115_v10 }
 0x54d   :  { %1884 = vmatmul.mubr.msk.f32.vlgmr.msra.gmra.mxu0 %vm173_vm1, %v1164_v13 }
 0x605   :  { %v1081_v5 = vpop.f32.mrf.mxu0 }
 0x606   :  { %v1155_v14 = vadd.f32 %v1154_v9, %v1081_v5 }
 0x607   :  { %v1828_v15 = vpop.f32.mrf.mxu0 }
 0x608   :  { %v1158_v16 = vadd.f32 %v2248_v26, %v1155_v14 }
 0x60a   :  { %1907 = vtanh.f32 %v1158_v16 }
 0x60d   :  { %v1305_v17 = vpop.f32.mrf.mxu0 }
 0x60f   :  { %v1885_v8 = vpop.f32.mrf.mxu0 }
 0x617   :  { %v1908_v6 = vpop.eup %1907 }
 0x618   :  { %1162 = vst [vmem:[#allocation11 + $0x30] sm:$0xff] %v1908_v6  ;;  %1873 = vmatmul.mubr.f32.vlgmr.msra.gmra.mxu1 %v1908_v6 }
 0x6d8   :  { %v1232_v18 = vpop.f32.mrf.mxu1 }
 0x6d9   :  { %v1306_v0 = vadd.f32 %v1305_v17, %v1232_v18 }
 0x6da   :  { %v1874_v19 = vpop.f32.mrf.mxu1 }
 0x6db   :  { %v1309_v10 = vadd.f32 %v2248_v26, %v1306_v0 }
 0x6dd   :  { %1909 = vtanh.f32 %v1309_v10 }
 0x6ea   :  { %v1910_v20 = vpop.eup %1909 }
 0x6eb   :  { %1313 = vst [vmem:[#allocation11 + $0x38] sm:$0xff] %v1910_v20 }
 0x6ec   :  { %2002 = shalt.err (!%p1999_p10)
}
 0x6ed   :  { %1325 = dma.vmem_to_hbm [thread:$0]  %s1320_s13, 1024, %s2503_s5, [#allocation5], %s2021_s23, %s2021_s23, %s2022_s24  }
 0x6ee   :  { %2017 = dma.done.wait [#allocation5], 1024  }
 0x6ef   :  { %2018 = vsyncadd [#allocation5], 4294966272 }
 0x6f0   :  { %1329 = vsyncpa [#allocation4], 1 }
 0x6f1   :  { %1330 = vsyncpa [#allocation7], 1 }
 0x6f2   :  { %1331 = vsyncpa [#allocation10], 1 }
 0x6f3   :  { %1332 = vsyncpa [#allocation5], 1 }

</bundles_post_ra>
